<compile_context>
chip_gen: v5e
topology: v5e:2x2
jax: 0.10.0
libtpu: 0.0.40
codegen_flags: <defaults>
</compile_context>

<pallas_src>
import jax
import jax.numpy as jnp
from jax.experimental import pallas as pl
from jax.experimental.pallas import tpu as pltpu

_LANE = 128
_MIN_GRID_STEPS = 8          # enough steps for pipeline overlap + 2 TCs on v7x


def _sublane_quantum(dtype):
    itemsize = jnp.dtype(dtype).itemsize
    return {4: 8, 2: 16, 1: 32}.get(itemsize, 8)


def _cdiv(a, b):
    return -(-a // b)


def _round_up(a, b):
    return _cdiv(a, b) * b


def _vmem_budgets():
    """Returns (per-half block budget bytes, vmem_limit_bytes) for this chip."""
    try:
        vmem = int(pltpu.get_tpu_info().vmem_capacity_bytes)
    except Exception:
        vmem = 64 * 1024 * 1024               # assume smallest (v7x-sized) VMEM
    if vmem >= 128 * 1024 * 1024:             # v5e / v6e: 128 MiB physical
        return 6 * 1024 * 1024, 64 * 1024 * 1024
    return 4 * 1024 * 1024, 48 * 1024 * 1024  # v7x: 64 MiB physical


def _pick_row_tile(S, L, n_batch, itemsize, sub_q, budget_bytes):
    """Row tile Ts for (S, L) half-blocks: a multiple of the sublane quantum,
    sized to the per-half VMEM budget, and shrunk if needed so the grid has
    enough steps to pipeline (and to feed both v7x TensorCores)."""
    rows_budget = max(sub_q, (budget_bytes // max(1, L * itemsize)) // sub_q * sub_q)
    Ts = S if rows_budget >= S else rows_budget          # full extent is always legal
    steps = n_batch * _cdiv(S, Ts)
    if steps < _MIN_GRID_STEPS and S > sub_q:
        want_tiles = _cdiv(_MIN_GRID_STEPS, n_batch)
        Ts_small = max(sub_q, _round_up(_cdiv(S, want_tiles), sub_q))
        Ts = min(Ts, Ts_small)                            # only ever shrink
    return Ts


def gated_activation_kernel(x_ref, o_ref):
    # x_ref: (2, Ts, L) -- row 0 is the tanh half, row 1 the sigmoid half.
    # o_ref: (Ts, L).
    a = x_ref[0]
    b = x_ref[1]
    if jnp.dtype(x_ref.dtype).itemsize >= 4:
        a = a.astype(jnp.float32)
        b = b.astype(jnp.float32)
    # sigmoid(b) == 0.5 * (tanh(0.5 * b) + 1): one single-pass EUP op instead
    # of exp + reciprocal, so the EUP never co-bottlenecks the HBM stream.
    gate = 0.5 * (jnp.tanh(0.5 * b) + 1.0)
    o_ref[...] = (jnp.tanh(a) * gate).astype(o_ref.dtype)


def _launch(x_view, N, S, L):
    """Run the kernel on a contiguous (N, 2, S, L) view; returns (N, S, L)."""
    dtype = x_view.dtype
    itemsize = jnp.dtype(dtype).itemsize
    sub_q = _sublane_quantum(dtype)
    block_budget, vmem_limit = _vmem_budgets()
    Ts = _pick_row_tile(S, L, N, itemsize, sub_q, block_budget)

    n_out = N * S * L
    cost = pl.CostEstimate(
        flops=4 * n_out,                      # scales / add / final multiply
        transcendentals=2 * n_out,            # tanh(a) + tanh(0.5*b)
        bytes_accessed=3 * n_out * itemsize,  # read both halves, write one
    )

    return pl.pallas_call(
        gated_activation_kernel,
        out_shape=jax.ShapeDtypeStruct((N, S, L), dtype),
        grid=(N, _cdiv(S, Ts)),
        in_specs=[pl.BlockSpec((None, 2, Ts, L), lambda i, j: (i, 0, j, 0))],
        out_specs=pl.BlockSpec((None, Ts, L), lambda i, j: (i, j, 0)),
        compiler_params=pltpu.CompilerParams(
            dimension_semantics=("parallel", "parallel"),
            vmem_limit_bytes=vmem_limit),
        cost_estimate=cost,
    )(x_view)


def gated_activation(x):
    """x: (N, C, H, W), C even. Returns tanh(x[:, :C//2]) * sigmoid(x[:, C//2:])."""
    N, C, H, W = x.shape
    assert C % 2 == 0, "channel dim must be even for chunk(2, dim=1)"
    Ch = C // 2
    M = Ch * H * W                    # flat element count of each channel half

    if M % _LANE == 0:
        # Lane-dense fold: each half viewed as (M // 128, 128). This is a free
        # contiguous refold and every store is an unmasked full-lane vst.
        S, L = M // _LANE, _LANE
    else:
        # TODO(synk): ragged halves (M % 128 != 0) keep the natural (Ch, H*W)
        # layout -> masked partial stores; correct but off the fast path.
        S, L = Ch, H * W

    out = _launch(x.reshape(N, 2, S, L), N, S, L)
    return out.reshape(N, Ch, H, W)


if __name__ == "__main__":
    key = jax.random.PRNGKey(0)
    # NCHW input: batch=2, channels=8 (each half has 4 channels), spatial 16x16.
    x = jax.random.normal(key, (2, 8, 16, 16), dtype=jnp.float32)

    y = jax.block_until_ready(gated_activation(x))

    # Pure-JAX reference of the PyTorch forward semantics.
    a_ref, b_ref = jnp.split(x, 2, axis=1)
    y_ref = jnp.tanh(a_ref) * jax.nn.sigmoid(b_ref)
    assert y.shape == (2, 4, 16, 16)
    assert jnp.allclose(y, y_ref, atol=1e-5, rtol=1e-5), "mismatch vs reference"

    print("KERNEL_OK")
</pallas_src>

<mosaic_0001>
module attributes {stable_mosaic.version = 11 : i64} {
  func.func @gated_activation_kernel(%arg0: i32, %arg1: i32, %arg2: memref<1x2x8x128xf32, #tpu.memory_space<vmem>>, %arg3: memref<1x8x128xf32, #tpu.memory_space<vmem>>) attributes {dimension_semantics = [#tpu.dimension_semantics<parallel>, #tpu.dimension_semantics<parallel>], iteration_bounds = array<i64: 2, 1>, scalar_prefetch = 0 : i64, scratch_operands = 0 : i64, tpu.core_type = #tpu.core_type<tc>, window_params = [{transform_indices = @transform_0, window_bounds = array<i64: 1, 2, 8, 128>}, {transform_indices = @transform_1, window_bounds = array<i64: 1, 8, 128>}]} {
    %c0 = arith.constant 0 : index
    %c0_0 = arith.constant 0 : index
    %c0_1 = arith.constant 0 : index
    %c0_2 = arith.constant 0 : index
    %0 = vector.load %arg2[%c0, %c0_0, %c0_1, %c0_2] : memref<1x2x8x128xf32, #tpu.memory_space<vmem>>, vector<1x1x8x128xf32>
    %1 = vector.shape_cast %0 : vector<1x1x8x128xf32> to vector<8x128xf32>
    %c0_3 = arith.constant 0 : index
    %c1 = arith.constant 1 : index
    %c0_4 = arith.constant 0 : index
    %c0_5 = arith.constant 0 : index
    %2 = vector.load %arg2[%c0_3, %c1, %c0_4, %c0_5] : memref<1x2x8x128xf32, #tpu.memory_space<vmem>>, vector<1x1x8x128xf32>
    %3 = vector.shape_cast %2 : vector<1x1x8x128xf32> to vector<8x128xf32>
    %cst = arith.constant 5.000000e-01 : f32
    %4 = vector.broadcast %cst : f32 to vector<8x128xf32>
    %5 = arith.mulf %4, %3 : vector<8x128xf32>
    %6 = math.tanh %5 : vector<8x128xf32>
    %cst_6 = arith.constant 1.000000e+00 : f32
    %7 = vector.broadcast %cst_6 : f32 to vector<8x128xf32>
    %8 = arith.addf %6, %7 : vector<8x128xf32>
    %cst_7 = arith.constant 5.000000e-01 : f32
    %9 = vector.broadcast %cst_7 : f32 to vector<8x128xf32>
    %10 = arith.mulf %9, %8 : vector<8x128xf32>
    %11 = math.tanh %1 : vector<8x128xf32>
    %12 = arith.mulf %11, %10 : vector<8x128xf32>
    %c0_8 = arith.constant 0 : index
    %c0_9 = arith.constant 0 : index
    %c0_10 = arith.constant 0 : index
    %13 = vector.load %arg3[%c0_8, %c0_9, %c0_10] : memref<1x8x128xf32, #tpu.memory_space<vmem>>, vector<1x8x128xf32>
    %14 = vector.shape_cast %13 : vector<1x8x128xf32> to vector<8x128xf32>
    %15 = vector.shape_cast %12 : vector<8x128xf32> to vector<1x8x128xf32>
    tpu.vector_store %arg3[%c0_8, %c0_9, %c0_10], %15 {strides = array<i32>} : memref<1x8x128xf32, #tpu.memory_space<vmem>>, vector<1x8x128xf32>,
    return
  }
  func.func @transform_0(%arg0: i32, %arg1: i32) -> (i32, i32, i32, i32) {
    %c0_i32 = arith.constant 0 : i32
    %c0_i32_0 = arith.constant 0 : i32
    %c0_i32_1 = arith.constant 0 : i32
    return %arg0, %c0_i32, %arg1, %c0_i32_0 : i32, i32, i32, i32
  }
  func.func @transform_1(%arg0: i32, %arg1: i32) -> (i32, i32, i32) {
    %c0_i32 = arith.constant 0 : i32
    %c0_i32_0 = arith.constant 0 : i32
    return %arg0, %arg1, %c0_i32 : i32, i32, i32
  }
}

</mosaic_0001>

<bundles_post_ra>
// kernel: tpu_custom_call.1
= control target key start
LH: loop header
LB: loop body
LE: loop exit
PB: predicated region body
PF: predicated region fallthrough
CT: control target
= control target key end

     0   :  { %6 = vsyncpa [#allocation3], 0  ;;  %s593_s0 = inlined_call_operand.hbm [shape: f32[2,2,8,128], index: 0, kind: input, shape index: {}]   ;;  %s594_s1 = inlined_call_operand.hbm [shape: f32[2,8,128], index: 1, kind: output, shape index: {}]  }
   0x1   :  { %8 = vsyncpa [#allocation3 + $0x1], 0 }
   0x2   :  { %9 = vsyncpa [#allocation4], 0 }
   0x3   :  { %11 = vsyncpa [#allocation4 + $0x1], 0  ;;  %s472_s6 = smov 0   ;;  %s474_s7 = smov 0  }
   0x4   :  { %s476_s8 = smov 0   ;;  %s478_s9 = smov 0  }
   0x5   :  { %s480_s10 = smov 0   ;;  %s482_s11 = smov 0  }
   0x6 LB: > { %s262_s12 = sadd.s32 4294967295, %s458_s11   ;;  %s263_s13 = sadd.s32 4294967294, %s458_s11   ;;  %s458_s11 = sphi %s482_s11, %s17_s11   ;;  %s454_s10 = sphi %s480_s10, %s603_s10   ;;  %s450_s9 = sphi %s478_s9, %s602_s9   ;;  %s446_s8 = sphi %s476_s8, %s601_s8   ;;  %s442_s7 = sphi %s474_s7, %s600_s7   ;;  %s438_s6 = sphi %s472_s6, %s599_s6  }
   0x7   : > { %s29_s14 = sadd.s32 1, %s454_s10  ;;  %s38_s15 = sadd.s32 1, %s446_s8 }
   0x8   : > { %p31_p0 = scmp.ge.s32.totalorder %s29_s14, 2  ;;  %p45_p1 = scmp.ne.s32.totalorder %s446_s8, %s442_s7 }
   0x9   : > { %p46_p2 = scmp.eq.s32.totalorder %s458_s11, 0  ;;  %p51_p3 = scmp.ne.s32.totalorder %s442_s7, %s438_s6 }
   0xa   : > { %s605_s14 = smov (%p31_p0, %s29_s14), 0  ;;  %p52_p5 = scmp.eq.s32.totalorder %s262_s12, 0 }
   0xb   : > { %p513_p4 = por %p46_p2, %p45_p1  ;;  %s33_s17 = ssub.s32 %s454_s10, %s605_s14 }
   0xc   : > { %p77_p6 = scmp.eq.s32.totalorder %s262_s12, 1  ;;  %p36_p7 = scmp.eq.s32.totalorder %s33_s17, 0 }
   0xd   : > { %p519_p8 = por %p52_p5, %p51_p3  ;;  %p83_p10 = scmp.eq.s32.totalorder %s263_s13, 1 }
   0xe   : > { %p523_p9 = por %p77_p6, %p45_p1  ;;  %p265_p12 = scmp.ge.s32.totalorder %s458_s11, 2 }
   0xf   : > { %s528_s20 = scalar_select %p36_p7, %s446_s8, %s38_s15  }
  0x10   : > { %p530_p11 = por %p83_p10, %p51_p3  ;;  %p290_p13 = scmp.lt.s32.totalorder %s458_s11, 2 }
  0x11   : > { %s103_s22 = sand.u32 1, %s446_s8   ;;  %s277_s24 = sshll.u32 %s454_s10, 4 }
  0x12   : > { %s266_s23 = sshll.u32 %s103_s22, 4  ;;  %s113_s27 = scalar_lea.hbm %s593_s0, %s277_s24 }
  0x13   : > { %s107_s28 = scalar_lea.vmem [#allocation2], %s266_s23  ;;  %s114_s30 = sshll.u32 %s113_s27, 4  ;;  %s115_s30 = int_to_ptr.hbm [resolvable:$true] %s114_s30 }
  0x14   : > { %s116_s29 = sshll.u32 %s107_s28, 4  ;;  %p283_p0 = pnand %p290_p13, %p513_p4  ;;  %s117_s29 = int_to_ptr.vmem [resolvable:$true] %s116_s29 }
  0x15   : > { %p269_p1 = scmp.ge.s32.totalorder %s458_s11, 1  ;;  %s104_s2 = scalar_lea.sflag [#allocation3], %s103_s22 }
  0x16   : > { %s460_s3 = smov 128   ;;  %s461_s4 = smov 8  }
  0x17   : > { %285 = dma.hbm_to_vmem [thread:$0]  (!%p283_p0), %s115_s30, 256, %s117_s29, %s104_s2, %s460_s3, %s460_s3, %s461_s4  }
  0x18   : > { %p124_p2 = scmp.lt.s32.totalorder %s458_s11, 3 }
  0x1a   : > { %p125_p3 = pnand %p269_p1, %p124_p2 }
  0x1b   : > { %s546_s5 = sand.u32 (!%p125_p3), 1, %s442_s7  }
  0x1c   : > { %128 = sbr.rel (%p125_p3) target bundleno = 53 (0x35), region = 24  ;;  %s270_s12 = sshll.u32 (!%p125_p3), %s546_s5, 4 }
  0x1d   : > { %s131_s13 = scalar_lea.sflag (!%p125_p3), [#allocation3], %s546_s5  ;;  %s134_s15 = scalar_lea.vmem (!%p125_p3), [#allocation2], %s270_s12 }
  0x21   : > { %429 = dma.done.wait (%p519_p8), %s131_s13, 256  }
  0x22   : > { %431 = vsyncadd (%p519_p8), %s131_s13, 4294967040  ;;  %v272_v0 = vld [vmem:[%s134_s15 + $0x8] sm:$0xff]  ;;  %v154_v2 = vld [vmem:[%s134_s15] sm:$0xff]  ;;  %s271_s16 = sshll.u32 %s546_s5, 3  ;;  %s274_s17 = sshll.u32 %s450_s9, 3 }
  0x23   : > { %v157_v1 = vmul.f32 0.5, %v272_v0  ;;  %s176_s24 = scalar_lea.hbm %s594_s1, %s274_s17  ;;  %s153_s18 = scalar_lea.vmem [#allocation5], %s271_s16 }
  0x24   : > { %s178_s25 = sshll.u32 %s153_s18, 4  ;;  %s180_s26 = sshll.u32 %s176_s24, 4  ;;  %s179_s25 = int_to_ptr.vmem [resolvable:$true] %s178_s25  ;;  %s181_s26 = int_to_ptr.hbm [resolvable:$true] %s180_s26 }
  0x25   : > { %342 = vtanh.f32 %v157_v1  ;;  %s165_s27 = scalar_lea.sflag [#allocation4], %s546_s5  ;;  %s390_s28 = sshra.s32 %s181_s26, 4  ;;  %s391_s28 = int_to_ptr.hbm [resolvable:$true] %s390_s28 }
  0x26   : > { %344 = vtanh.f32 %v154_v2  ;;  %s392_s9 = scalar_lea.hbm %s391_s28, 8  ;;  %s396_s2 = scalar_lea.hbm %s594_s1, 16 }
  0x27   : > { %p393_p4 = scmp.ne.s32.totalorder %s391_s28, %s392_s9  ;;  %p397_p7 = scmp.lt.s32.totalorder %s391_s28, %s594_s1 }
  0x28   : > { %p398_p8 = scmp.lt.s32.totalorder %s396_s2, %s392_s9 }
  0x29   : > { %p394_p5 = pnand %p393_p4, %p523_p9 }
  0x2a   : > { %p399_p10 = por %p398_p8, %p397_p7 }
  0x2b   : > { %v343_v3 = vpop.eup %342  ;;  %p395_p6 = pneg %p394_p5 }
  0x2c   : > { %v159_v4 = vadd.f32 1.0, %v343_v3  ;;  %v345_v5 = vpop.eup %344 }
  0x2d   : > { %p400_p13 = pnand %p399_p10, %p395_p6 }
  0x2e   : > { %v160_v6 = vmul.f32 0.5, %v159_v4 }
  0x30   : > { %v162_v7 = vmul.f32 %v345_v5, %v160_v6 }
  0x32   : > { %163 = vst [vmem:[%s153_s18] sm:$0xff] %v162_v7 }
  0x33   : > { %403 = shalt.err (!%p400_p13)
}
  0x34   : > { %280 = dma.vmem_to_hbm [thread:$0]  (%p523_p9), %s179_s25, 128, %s181_s26, %s165_s27  }
  0x35 PF: > { %s192_s5 = sand.u32 1, %s438_s6   ;;  %p287_p0 = pnand %p265_p12, %p530_p11 }
  0x36   : > { %s193_s12 = scalar_lea.sflag [#allocation4], %s192_s5 }
  0x37   : > { %p288_p1 = pneg %p287_p0 }
  0x39   : > { %433 = dma.done.wait (%p288_p1), %s193_s12, 128  }
  0x3a   : > { %435 = vsyncadd (%p288_p1), %s193_s12, 4294967168  ;;  %s17_s11 = sadd.s32 1, %s458_s11   ;;  %s599_s6 = smov %s442_s7 }
  0x3b   : > { %p14_p2 = scmp.ge.s32.totalorder %s17_s11, 4   ;;  %s600_s7 = smov %s446_s8 }
  0x3c   : > { %s601_s8 = smov %s528_s20  ;;  %s602_s9 = smov %s454_s10 }
  0x3d   : > { %s603_s10 = smov %s605_s14  ;;  %16 = sbr.rel (!%p14_p2) target bundleno = 6 (0x6), region = 70 }
  0x42   :  { %199 = vsyncpa [#allocation3], 1 }
  0x43   :  { %201 = vsyncpa [#allocation3 + $0x1], 1 }
  0x44   :  { %202 = vsyncpa [#allocation4], 1 }
  0x45   :  { %204 = vsyncpa [#allocation4 + $0x1], 1 }

</bundles_post_ra>
